<compile_context>
chip_gen: v7x
topology: tpu7x:2x2x1
jax: 0.10.0
libtpu: 0.0.40
codegen_flags: <defaults>
</compile_context>

<pallas_src>
import jax
import jax.numpy as jnp
from jax.experimental import pallas as pl
from jax.experimental.pallas import tpu as pltpu

_EPS = 1e-6  # matches torch F.pairwise_distance default eps


def _multi_contrastive_kernel(margin_ref, o1_ref, o2_ref, wd_ref, ws_ref, out_ref):
    # o1/o2: (TILE_B, D) feature blocks; wd/ws: (TILE_B, 1) f32 weights.
    o1 = o1_ref[...].astype(jnp.float32)
    o2 = o2_ref[...].astype(jnp.float32)

    # pairwise_distance: ||x1 - x2 + eps||_2 along the feature dim
    diff = o1 - o2 + _EPS
    dist_sq = jnp.sum(diff * diff, axis=-1, keepdims=True)        # (TILE_B, 1)
    dist = jnp.sqrt(dist_sq)                                      # (TILE_B, 1)

    margin = margin_ref[0]                                        # SMEM scalar
    clamped = jnp.maximum(margin - dist, 0.0)                     # (TILE_B, 1)

    # weighted per-sample contribution; padded rows have zero weights
    per_sample = wd_ref[...] * dist_sq + ws_ref[...] * (clamped * clamped)
    partial = jnp.sum(per_sample)                                 # scalar

    # lane-dense partial-sum write (one full (8,128) tile per grid step)
    out_ref[...] = jnp.broadcast_to(partial, out_ref.shape).astype(jnp.float32)


def _round_up(x, m):
    return ((x + m - 1) // m) * m


def _choose_tile_b(batch, dim_d, tile_b=None):
    """Largest multiple-of-8 row tile with 2 streams x 2 buffers <= ~16 MiB."""
    b_ceil = _round_up(batch, 8)
    if tile_b is None:
        budget = 16 * 1024 * 1024
        bytes_per_row = 2 * 2 * dim_d * 4      # 2 inputs x 2 pipeline buffers x f32
        tile_b = max(8, (budget // bytes_per_row) // 8 * 8)
        tile_b = min(tile_b, 1024)             # 512-1024 rows ~ HBM roofline
    else:
        tile_b = max(8, _round_up(tile_b, 8))
    return min(tile_b, b_ceil)


def multi_contrastive_loss(output, gt_label, margin=1.5, dim=1000, tile_b=None):
    """Pallas TPU implementation of MultiContrastiveLoss.forward.

    output   : (B, D) float features
    gt_label : (B,)   integer labels
    Returns a scalar float32 loss.
    """
    output = jnp.asarray(output)
    B, D = output.shape
    gt_label = jnp.asarray(gt_label).reshape(B)

    # compare is always roll(output, 1, 0) in the reference loop
    rolled = jnp.roll(output, 1, axis=0)

    # sum over the B roll offsets of (label == rolled label) collapses to a
    # per-sample count of equal labels (including self).
    counts = jnp.sum(
        (gt_label[:, None] == gt_label[None, :]).astype(jnp.float32), axis=1
    )
    w_same = counts.reshape(B, 1)
    w_diff = (jnp.float32(B) - counts).reshape(B, 1)

    tile = _choose_tile_b(B, D, tile_b)
    b_pad = _round_up(B, tile)
    pad = b_pad - B
    if pad:
        output = jnp.pad(output, ((0, pad), (0, 0)))
        rolled = jnp.pad(rolled, ((0, pad), (0, 0)))
        w_same = jnp.pad(w_same, ((0, pad), (0, 0)))
        w_diff = jnp.pad(w_diff, ((0, pad), (0, 0)))
    num_tiles = b_pad // tile

    margin_arr = jnp.full((1,), margin, dtype=jnp.float32)

    partials = pl.pallas_call(
        _multi_contrastive_kernel,
        out_shape=jax.ShapeDtypeStruct((num_tiles, 8, 128), jnp.float32),
        grid=(num_tiles,),
        in_specs=[
            pl.BlockSpec(memory_space=pltpu.MemorySpace.SMEM),   # margin scalar
            pl.BlockSpec((tile, D), lambda i: (i, 0)),           # output tile
            pl.BlockSpec((tile, D), lambda i: (i, 0)),           # rolled tile
            pl.BlockSpec((tile, 1), lambda i: (i, 0)),           # w_diff tile
            pl.BlockSpec((tile, 1), lambda i: (i, 0)),           # w_same tile
        ],
        out_specs=pl.BlockSpec((1, 8, 128), lambda i: (i, 0, 0)),
        compiler_params=pltpu.CompilerParams(
            dimension_semantics=("parallel",),
            vmem_limit_bytes=32 * 1024 * 1024,
        ),
    )(margin_arr, output, rolled, w_diff, w_same)

    total = jnp.sum(partials[:, 0, 0])
    return total / (jnp.float32(B) * jnp.float32(dim))


def multi_contrastive_loss_ref(output, gt_label, margin=1.5, dim=1000):
    """Pure-JAX reference that mirrors the PyTorch loop literally."""
    output = jnp.asarray(output, dtype=jnp.float32)
    B = output.shape[0]
    compare_label = gt_label
    loss = jnp.float32(0.0)
    for _ in range(B):
        compare = jnp.roll(output, 1, axis=0)            # rolls original output
        compare_label = jnp.roll(compare_label, 1, axis=0)
        label = (gt_label == compare_label).astype(jnp.float32)
        diff = output - compare + _EPS
        dist = jnp.sqrt(jnp.sum(diff * diff, axis=-1))
        clamped = jnp.maximum(margin - dist, 0.0)
        loss = loss + jnp.mean((1.0 - label) * dist * dist + label * clamped * clamped)
    return loss / dim


if __name__ == "__main__":
    key = jax.random.PRNGKey(0)
    k1, k2 = jax.random.split(key, 2)

    B, D = 24, 32  # small shapes implied by the forward: (batch, embedding_dim)
    output = jax.random.normal(k1, (B, D), dtype=jnp.float32)
    gt_label = jax.random.randint(k2, (B,), 0, 3, dtype=jnp.int32)

    ref = multi_contrastive_loss_ref(output, gt_label, margin=1.5, dim=1000)

    # default tiling (single tile for this small B)
    loss = multi_contrastive_loss(output, gt_label, margin=1.5, dim=1000)
    loss = jax.block_until_ready(loss)
    assert jnp.allclose(loss, ref, rtol=1e-4, atol=1e-5), (loss, ref)

    # forced small tile -> exercises the multi-tile "parallel" grid path
    loss_tiled = multi_contrastive_loss(output, gt_label, margin=1.5, dim=1000, tile_b=8)
    loss_tiled = jax.block_until_ready(loss_tiled)
    assert jnp.allclose(loss_tiled, ref, rtol=1e-4, atol=1e-5), (loss_tiled, ref)

    print("KERNEL_OK")
</pallas_src>

<mosaic_0001>
module attributes {stable_mosaic.version = 11 : i64} {
  func.func @_multi_contrastive_kernel(%arg0: i32, %arg1: memref<1xf32, #tpu.memory_space<smem>>, %arg2: memref<24x32xf32, #tpu.memory_space<vmem>>, %arg3: memref<24x32xf32, #tpu.memory_space<vmem>>, %arg4: memref<24x1xf32, #tpu.memory_space<vmem>>, %arg5: memref<24x1xf32, #tpu.memory_space<vmem>>, %arg6: memref<1x8x128xf32, #tpu.memory_space<vmem>>) attributes {dimension_semantics = [#tpu.dimension_semantics<parallel>], iteration_bounds = array<i64: 1>, scalar_prefetch = 0 : i64, scratch_operands = 0 : i64, tpu.core_type = #tpu.core_type<tc>, window_params = [{transform_indices = @transform_0, window_bounds = array<i64: 1>}, {transform_indices = @transform_1, window_bounds = array<i64: 24, 32>}, {transform_indices = @transform_2, window_bounds = array<i64: 24, 32>}, {transform_indices = @transform_3, window_bounds = array<i64: 24, 1>}, {transform_indices = @transform_4, window_bounds = array<i64: 24, 1>}, {transform_indices = @transform_5, window_bounds = array<i64: 1, 8, 128>}]} {
    %c0 = arith.constant 0 : index
    %c0_0 = arith.constant 0 : index
    %0 = vector.load %arg2[%c0, %c0_0] : memref<24x32xf32, #tpu.memory_space<vmem>>, vector<24x32xf32>
    %c0_1 = arith.constant 0 : index
    %c0_2 = arith.constant 0 : index
    %1 = vector.load %arg3[%c0_1, %c0_2] : memref<24x32xf32, #tpu.memory_space<vmem>>, vector<24x32xf32>
    %2 = arith.subf %0, %1 : vector<24x32xf32>
    %cst = arith.constant 9.99999997E-7 : f32
    %3 = vector.broadcast %cst : f32 to vector<24x32xf32>
    %4 = arith.addf %2, %3 : vector<24x32xf32>
    %5 = arith.mulf %4, %4 : vector<24x32xf32>
    %cst_3 = arith.constant dense<0.000000e+00> : vector<24xf32>
    %6 = vector.multi_reduction <add>, %5, %cst_3 [1] : vector<24x32xf32> to vector<24xf32>
    %7 = vector.shape_cast %6 : vector<24xf32> to vector<24x1xf32>
    %8 = math.sqrt %7 : vector<24x1xf32>
    %c0_4 = arith.constant 0 : index
    %9 = memref.load %arg1[%c0_4] : memref<1xf32, #tpu.memory_space<smem>>
    %10 = vector.broadcast %9 : f32 to vector<24x1xf32>
    %11 = arith.subf %10, %8 : vector<24x1xf32>
    %cst_5 = arith.constant 0.000000e+00 : f32
    %12 = vector.broadcast %cst_5 : f32 to vector<24x1xf32>
    %13 = arith.maximumf %11, %12 : vector<24x1xf32>
    %c0_6 = arith.constant 0 : index
    %c0_7 = arith.constant 0 : index
    %14 = vector.load %arg4[%c0_6, %c0_7] : memref<24x1xf32, #tpu.memory_space<vmem>>, vector<24x1xf32>
    %15 = arith.mulf %14, %7 : vector<24x1xf32>
    %c0_8 = arith.constant 0 : index
    %c0_9 = arith.constant 0 : index
    %16 = vector.load %arg5[%c0_8, %c0_9] : memref<24x1xf32, #tpu.memory_space<vmem>>, vector<24x1xf32>
    %17 = arith.mulf %13, %13 : vector<24x1xf32>
    %18 = arith.mulf %16, %17 : vector<24x1xf32>
    %19 = arith.addf %15, %18 : vector<24x1xf32>
    %20 = vector.shape_cast %19 : vector<24x1xf32> to vector<1x24x1xf32>
    %cst_10 = arith.constant dense<0.000000e+00> : vector<1xf32>
    %21 = vector.multi_reduction <add>, %20, %cst_10 [1, 2] : vector<1x24x1xf32> to vector<1xf32>
    %22 = vector.shape_cast %21 : vector<1xf32> to vector<1x1x1xf32>
    %23 = vector.extract %22[0, 0, 0] : f32 from vector<1x1x1xf32>
    %24 = vector.broadcast %23 : f32 to vector<1x8x128xf32>
    %c0_11 = arith.constant 0 : index
    %c0_12 = arith.constant 0 : index
    %c0_13 = arith.constant 0 : index
    %25 = vector.load %arg6[%c0_11, %c0_12, %c0_13] : memref<1x8x128xf32, #tpu.memory_space<vmem>>, vector<1x8x128xf32>
    tpu.vector_store %arg6[%c0_11, %c0_12, %c0_13], %24 {strides = array<i32>} : memref<1x8x128xf32, #tpu.memory_space<vmem>>, vector<1x8x128xf32>,
    return
  }
  func.func @transform_0(%arg0: i32) -> i32 {
    %c0_i32 = arith.constant 0 : i32
    %c0_i32_0 = arith.constant 0 : i32
    return %c0_i32 : i32
  }
  func.func @transform_1(%arg0: i32) -> (i32, i32) {
    %c0_i32 = arith.constant 0 : i32
    %c0_i32_0 = arith.constant 0 : i32
    return %arg0, %c0_i32 : i32, i32
  }
  func.func @transform_2(%arg0: i32) -> (i32, i32) {
    %c0_i32 = arith.constant 0 : i32
    %c0_i32_0 = arith.constant 0 : i32
    return %arg0, %c0_i32 : i32, i32
  }
  func.func @transform_3(%arg0: i32) -> (i32, i32) {
    %c0_i32 = arith.constant 0 : i32
    %c0_i32_0 = arith.constant 0 : i32
    return %arg0, %c0_i32 : i32, i32
  }
  func.func @transform_4(%arg0: i32) -> (i32, i32) {
    %c0_i32 = arith.constant 0 : i32
    %c0_i32_0 = arith.constant 0 : i32
    return %arg0, %c0_i32 : i32, i32
  }
  func.func @transform_5(%arg0: i32) -> (i32, i32, i32) {
    %c0_i32 = arith.constant 0 : i32
    %c0_i32_0 = arith.constant 0 : i32
    %c0_i32_1 = arith.constant 0 : i32
    return %arg0, %c0_i32, %c0_i32_0 : i32, i32, i32
  }
}

</mosaic_0001>

<bundles_post_ra>
// kernel: tpu_custom_call.1
= control target key start
LH: loop header
LB: loop body
LE: loop exit
PB: predicated region body
PF: predicated region fallthrough
CT: control target
= control target key end

     0   :  { %s240_s0 = inlined_call_operand.<no memory space> [shape: f32[1], index: 0, kind: input, shape index: {}]   ;;  %s241_s1 = inlined_call_operand.vmem [shape: f32[24,32], index: 1, kind: input, shape index: {}]   ;;  %s242_s2 = inlined_call_operand.vmem [shape: f32[24,32], index: 2, kind: input, shape index: {}]   ;;  %s243_s3 = inlined_call_operand.vmem [shape: f32[24,1], index: 3, kind: input, shape index: {}]   ;;  %s244_s4 = inlined_call_operand.vmem [shape: f32[24,1], index: 4, kind: input, shape index: {}]   ;;  %s245_s5 = inlined_call_operand.hbm [shape: f32[1,8,128], index: 5, kind: output, shape index: {}]  }
   0x1   :  { %v24_v0 = vld [vmem:[%s241_s1 + $0x10] sm:$0xff]  ;;  %v22_v2 = vld [vmem:[%s241_s1] sm:$0xff]  ;;  %v23_v5 = vld [vmem:[%s241_s1 + $0x8] sm:$0xff] }
   0x2   :  { %v27_v1 = vld [vmem:[%s242_s2 + $0x10] sm:$0xff]  ;;  %v25_v4 = vld [vmem:[%s242_s2] sm:$0xff]  ;;  %v26_v6 = vld [vmem:[%s242_s2 + $0x8] sm:$0xff] }
   0x3   :  { %v30_v3 = vsub.f32 %v24_v0, %v27_v1  ;;  %v28_v7 = vsub.f32 %v22_v2, %v25_v4  ;;  %v29_v8 = vsub.f32 %v23_v5, %v26_v6 }
   0x4   :  { %11 = vsyncpa [#allocation4], 0  ;;  %vm37_vm0 = vcmask 261120   ;;  %v69_v26 = vstv %s240_s0  ;;  %v82_v41 = vld [vmem:[%s244_s4] sm:$0xff]  ;;  %v84_v46 = vld [vmem:[%s244_s4 + $0x10] sm:$0xff]  ;;  %vm94_vm7 = vcmask 7168  }
   0x5   :  { %v33_v9 = vadd.f32 1e-06, %v30_v3  ;;  %v31_v10 = vadd.f32 1e-06, %v28_v7  ;;  %v32_v11 = vadd.f32 1e-06, %v29_v8 }
   0x6   :  { %v76_v45 = vld [vmem:[%s243_s3] sm:$0xff]  ;;  %v77_v49 = vld [vmem:[%s243_s3 + $0x8] sm:$0xff]  ;;  %v78_v50 = vld [vmem:[%s243_s3 + $0x10] sm:$0xff]  ;;  %s158_s3 = smov [#allocation3]  }
   0x7   :  { %v36_v12 = vmul.f32 %v33_v9, %v33_v9  ;;  %v34_v13 = vmul.f32 %v31_v10, %v31_v10  ;;  %v35_v14 = vmul.f32 %v32_v11, %v32_v11  ;;  %v83_v51 = vld [vmem:[%s244_s4 + $0x8] sm:$0xff]  ;;  %s117_s4 = sshll.u32 %s158_s3, 4  ;;  %s118_s4 = int_to_ptr.vmem [resolvable:$true] %s117_s4 }
   0x8   :  { %s134_s17 = scalar_lea.vmem %s118_s4, 128  ;;  %p139_p1 = scmp.lt.s32.totalorder %s118_s4, %s118_s4 }
   0x9   :  { %v44_v15 = vsel %vm37_vm0, %v36_v12, 0.0  ;;  %v38_v16 = vsel %vm37_vm0, %v34_v13, 0.0  ;;  %v41_v17 = vsel %vm37_vm0, %v35_v14, 0.0  ;;  %p135_p0 = scmp.ne.s32.totalorder %s118_s4, %s134_s17  ;;  %p140_p2 = scmp.lt.s32.totalorder %s134_s17, %s134_s17 }
   0xa   :  { %45 = vadd.xlane.f32.xlu1 %v44_v15  ;;  %39 = vadd.xlane.f32.xlu0 %v38_v16 }
   0xb   :  { %p141_p3 = por %p140_p2, %p139_p1 }
   0xd   :  { %p142_p4 = pnand %p141_p3, %p135_p0 }
   0xe   :  { %42 = vadd.xlane.f32.xlu0 %v41_v17 }
  0x97   :  { %v46_v18 = vpop.xlane.xlu1 %45  ;;  %v40_v19 = vpop.xlane.xlu0 %39 }
  0x98   :  { %128 = vrsqrt.f32 %v46_v18  ;;  %vm63_vm1 = vcmp.eq.f32.partialorder %v46_v18, inf  ;;  %v66_v25 = vand.u32 2147483648, %v46_v18  ;;  %vm49_vm2 = vcmp.eq.f32.partialorder %v40_v19, inf }
  0x99   :  { %130 = vrsqrt.f32 %v40_v19  ;;  %v52_v27 = vand.u32 2147483648, %v40_v19  ;;  %vm65_vm3 = vcmp.eq.f32.partialorder %v46_v18, 0.0  ;;  %vm51_vm4 = vcmp.eq.f32.partialorder %v40_v19, 0.0 }
  0x9a   :  { %v79_v52 = vmul.f32 %v76_v45, %v40_v19  ;;  %v81_v56 = vmul.f32 %v78_v50, %v46_v18 }
  0x9b   :  { %v43_v20 = vpop.xlane.xlu0 %42 }
  0x9c   :  { %132 = vrsqrt.f32 %v43_v20  ;;  %vm56_vm5 = vcmp.eq.f32.partialorder %v43_v20, inf  ;;  %v59_v36 = vand.u32 2147483648, %v43_v20  ;;  %vm58_vm6 = vcmp.eq.f32.partialorder %v43_v20, 0.0 }
  0x9d   :  { %v80_v55 = vmul.f32 %v77_v49, %v43_v20 }
  0xa2   :  { %v129_v21 = vpop.eup %128 }
  0xa3   :  { %v131_v22 = vpop.eup %130  ;;  %v62_v23 = vmul.f32 %v129_v21, %v46_v18 }
  0xa4   :  { %v48_v24 = vmul.f32 %v131_v22, %v40_v19 }
  0xa5   :  { %v64_v28 = vsel %vm63_vm1, %v46_v18, %v62_v23 }
  0xa6   :  { %v50_v29 = vsel %vm49_vm2, %v40_v19, %v48_v24  ;;  %v67_v30 = vsel %vm65_vm3, %v66_v25, %v64_v28  ;;  %v133_v31 = vpop.eup %132 }
  0xa7   :  { %v53_v32 = vsel %vm51_vm4, %v52_v27, %v50_v29  ;;  %v72_v33 = vsub.f32 %v69_v26, %v67_v30  ;;  %v55_v34 = vmul.f32 %v133_v31, %v43_v20 }
  0xa8   :  { %v70_v35 = vsub.f32 %v69_v26, %v53_v32 }
  0xa9   :  { %v75_v37 = vmax.f32 %v72_v33, 0.0  ;;  %v57_v38 = vsel %vm56_vm5, %v43_v20, %v55_v34 }
  0xaa   :  { %v73_v39 = vmax.f32 %v70_v35, 0.0  ;;  %v60_v40 = vsel %vm58_vm6, %v59_v36, %v57_v38 }
  0xab   :  { %v71_v42 = vsub.f32 %v69_v26, %v60_v40  ;;  %v87_v44 = vmul.f32 %v75_v37, %v75_v37 }
  0xac   :  { %v85_v43 = vmul.f32 %v73_v39, %v73_v39 }
  0xad   :  { %v74_v47 = vmax.f32 %v71_v42, 0.0  ;;  %v90_v54 = vmul.f32 %v87_v44, %v84_v46 }
  0xae   :  { %v88_v48 = vmul.f32 %v85_v43, %v82_v41 }
  0xaf   :  { %v86_v53 = vmul.f32 %v74_v47, %v74_v47  ;;  %v93_v60 = vadd.f32 %v90_v54, %v81_v56 }
  0xb0   :  { %v91_v58 = vadd.f32 %v88_v48, %v79_v52 }
  0xb1   :  { %v89_v57 = vmul.f32 %v86_v53, %v83_v51  ;;  %v98_v0 = vsel %vm94_vm7, %v93_v60, 0.0 }
  0xb2   :  { %v95_v61 = vsel %vm94_vm7, %v91_v58, 0.0 }
  0xb3   :  { %v92_v59 = vadd.f32 %v89_v57, %v80_v55 }
  0xb5   :  { %v96_v62 = vsel %vm94_vm7, %v92_v59, 0.0 }
  0xb6   :  { %v97_v63 = vadd.f32 %v96_v62, %v95_v61 }
  0xb8   :  { %v99_v1 = vadd.f32 %v98_v0, %v97_v63 }
  0xba   :  { %100 = vadd.xlane.f32.xlu1 %v99_v1 }
 0x147   :  { %v101_v2 = vpop.xlane.xlu1 %100 }
 0x148   :  { %v102_v3 = vrot.slane %v101_v2, 4 }
 0x14a   :  { %v103_v4 = vadd.f32 %v102_v3, %v101_v2 }
 0x14c   :  { %v104_v5 = vrot.slane %v103_v4, 2 }
 0x14e   :  { %v105_v6 = vadd.f32 %v104_v5, %v103_v4 }
 0x150   :  { %v106_v7 = vrot.slane %v105_v6, 1 }
 0x152   :  { %v107_v8 = vadd.f32 %v106_v7, %v105_v6 }
 0x154   :  { %125 = vpush %v107_v8 }
 0x185   :  { %s126_s16 = spop %125 }
 0x186   :  { %v109_v9 = vstv %s126_s16 }
 0x187   :  { %110 = vst [vmem:[#allocation3] sm:$0xff] %v109_v9 }
 0x188   :  { %145 = shalt.err (!%p142_p4)
}
 0x189   :  { %s146_s20 = scalar_lea.hbm %s245_s5, 128 }
 0x18a   :  { %p147_p5 = scmp.ne.s32.totalorder %s245_s5, %s146_s20  ;;  %p150_p6 = scmp.lt.u32.totalorder %s146_s20, %s245_s5 }
 0x18c   :  { %p152_p7 = pnand %p150_p6, %p147_p5 }
 0x18e   :  { %155 = shalt.err (!%p152_p7)
}
 0x18f   :  { %120 = dma.vmem_to_hbm [thread:$0]  %s118_s4, 128, %s245_s5, [#allocation4]  }
 0x190   :  { %156 = dma.done.wait [#allocation4], 128  }
 0x191   :  { %157 = vsyncadd [#allocation4], 4294967168 }
 0x192   :  { %124 = vsyncpa [#allocation4], 1 }

</bundles_post_ra>
